<compile_context>
chip_gen: v7x
topology: tpu7x:2x2x1
jax: 0.10.0
libtpu: 0.0.40
codegen_flags: <defaults>
</compile_context>

<pallas_src>
import functools

import jax
import jax.numpy as jnp
from jax.experimental import pallas as pl
from jax.experimental.pallas import tpu as pltpu


def _round_up(v, m):
    return ((v + m - 1) // m) * m


def time_att_kernel(x_ref, w1_ref, w2_ref, wt_ref, bt_ref, o_ref, *,
                    mxu_dtype, packed_out):
    # x_ref:  (TB, T, D)  TB batch elements
    # w1_ref: (D, D)      linear1.weight.T   (x @ w1 == linear1(x))
    # w2_ref: (1, D)      linear2.weight     (row vector)
    # wt_ref: (T, 1)      time.weight.T      (column vector)
    # bt_ref: (1, 1)      time.bias          (SMEM scalar)
    # o_ref:  (TB, D)  or lane-dense (1, TB*D)
    tb, t, d = x_ref.shape
    x = x_ref[...]                                                   # (TB, T, D)

    # ---- linear1 (the only real MXU matmul) + tanh (EUP) -------------------
    w1 = w1_ref[...]
    if mxu_dtype is not None and mxu_dtype != x.dtype:
        xm, w1m = x.astype(mxu_dtype), w1.astype(mxu_dtype)
    else:
        xm, w1m = x, w1.astype(x.dtype)
    if t % 8 == 0:
        # Leading-dim merge only (lane dim untouched) -> free value reshape.
        h = jnp.dot(xm.reshape(tb * t, d), w1m,
                    preferred_element_type=jnp.float32).reshape(tb, t, d)
    else:
        # T not sublane-aligned: keep the batched form, no reshape relayout.
        h = jax.lax.dot_general(xm, w1m, (((2,), (0,)), ((), ())),
                                preferred_element_type=jnp.float32)
    h = jnp.tanh(h)                                                  # f32 (v5e-safe)

    # ---- linear2 (N=1 matvec) as VPU multiply + lane reduction -------------
    y = jnp.sum(h * w2_ref[...].astype(jnp.float32), axis=-1, keepdims=True)

    # ---- softmax over the time axis -----------------------------------------
    y = y - jnp.max(y, axis=1, keepdims=True)
    e = jnp.exp(y)
    beta = e * pl.reciprocal(jnp.sum(e, axis=1, keepdims=True), approx=True)

    # ---- time-Linear (M=1) folded into the softmax weights ------------------
    #   out[b, d] = sum_t beta[b, t] * wt[t] * x[b, t, d] + bias
    w = beta * wt_ref[...].astype(jnp.float32)                       # (TB, T, 1)
    out = jnp.sum(w * x.astype(jnp.float32), axis=1) + bt_ref[0, 0]  # (TB, D)

    if packed_out:
        o_ref[...] = out.reshape(1, tb * d).astype(o_ref.dtype)      # lane-dense
    else:
        o_ref[...] = out.astype(o_ref.dtype)


def _tpu_caps():
    """(physical VMEM bytes, TensorCores sharing the grid), with safe fallbacks."""
    num_tc, phys_vmem = 1, 64 << 20
    try:
        kind = jax.devices()[0].device_kind.lower()
    except Exception:
        kind = ""
    if "v7" in kind or kind.startswith("tpu7"):
        num_tc, phys_vmem = 2, 64 << 20          # v7x: 2 TCs/chip, 64 MiB VMEM/TC
    elif any(tag in kind for tag in ("v6", "v5", "v4")):
        num_tc, phys_vmem = 1, 128 << 20         # single TC, 128 MiB VMEM
    try:
        phys_vmem = int(pltpu.get_tpu_info().vmem_capacity_bytes)
    except Exception:
        pass
    return phys_vmem, num_tc


def _choose_tb(B, T, D, itemsize, num_tc, slab_budget_bytes):
    # Padded per-batch-element VMEM footprint ((8,128) vreg tiling):
    #   2x double-buffered input slab + ~3 live f32 temporaries (h, w*x, x_f32).
    row_in = _round_up(T, 8) * _round_up(D, 128) * itemsize
    row_f32 = _round_up(T, 8) * _round_up(D, 128) * 4
    per_b = 2 * row_in + 3 * row_f32
    tb_cap = max(1, slab_budget_bytes // per_b)
    tb_cap = min(tb_cap, max(1, 4096 // max(T, 1)))   # keep TB*T in the few-K-row range
    tb_cap = min(tb_cap, B)

    min_blocks = min(num_tc, B)        # >=2 blocks only when there are >=2 TCs
    best_key, best_tb = None, 1
    for cand in range(tb_cap, 0, -1):
        nb = -(-B // cand)
        if nb < min_blocks:
            continue                   # too few blocks to feed every TensorCore
        rounds = -(-nb // num_tc)      # sequential rounds per TensorCore
        pad = nb * cand - B            # padded rows => jnp.pad => extra HBM pass
        key = (rounds + (1 if pad else 0), pad, -cand)
        if best_key is None or key < best_key:
            best_key, best_tb = key, cand
    return best_tb


def time_att(x, w1_t, w2, wt_col, bt, *, tb=None, mxu_dtype=None):
    """x: (B, T, D).  Returns (B, D) — matches Time_att.forward.

    Parameter layout (derived from the PyTorch module):
      w1_t:   (D, D)  linear1.weight.T
      w2:     (1, D)  linear2.weight
      wt_col: (T, 1)  time.weight.T
      bt:     (1, 1)  time.bias
    """
    B, T, D = x.shape
    phys_vmem, num_tc = _tpu_caps()
    # Explicit scoped-VMEM limit (defaults are only 16/32 MiB, far below physical).
    vmem_limit = int(min(phys_vmem * 3 // 4, 100 << 20))

    if mxu_dtype is None and x.dtype == jnp.bfloat16:
        mxu_dtype = jnp.bfloat16       # bf16-native MXU path (v5e/v6e/v7x)

    if tb is None:
        weight_bytes = (_round_up(D, 8) * _round_up(D, 128)       # w1 (single-buffered)
                        + 8 * _round_up(D, 128)                   # w2
                        + _round_up(T, 8) * 128) * 4              # wt
        slab_budget = max(vmem_limit * 3 // 4 - weight_bytes, 1)
        tb = _choose_tb(B, T, D, x.dtype.itemsize, num_tc, slab_budget)
    tb = max(1, min(tb, B))

    n_blocks = -(-B // tb)
    Bp = n_blocks * tb
    x_in = x if Bp == B else jnp.pad(x, ((0, Bp - B), (0, 0), (0, 0)))

    packed_out = (D % 128 != 0)        # lane-dense (1, TB*D) output when D < 128

    def run(packed, single_buffer_weights):
        kernel = functools.partial(time_att_kernel, mxu_dtype=mxu_dtype,
                                   packed_out=packed)
        if packed:
            out_shape = jax.ShapeDtypeStruct((n_blocks, tb * D), x.dtype)
            out_spec = pl.BlockSpec((1, tb * D), lambda b: (b, 0))
        else:
            out_shape = jax.ShapeDtypeStruct((Bp, D), x.dtype)
            out_spec = pl.BlockSpec((tb, D), lambda b: (b, 0))
        wkw = ({"pipeline_mode": pl.Buffered(1)} if single_buffer_weights else {})
        in_specs = [
            pl.BlockSpec((tb, T, D), lambda b: (b, 0, 0)),           # x slab
            pl.BlockSpec((D, D), lambda b: (0, 0), **wkw),           # linear1.weight.T
            pl.BlockSpec((1, D), lambda b: (0, 0), **wkw),           # linear2.weight
            pl.BlockSpec((T, 1), lambda b: (0, 0), **wkw),           # time.weight.T
            pl.BlockSpec(memory_space=pltpu.MemorySpace.SMEM),       # time.bias scalar
        ]
        out = pl.pallas_call(
            kernel,
            out_shape=out_shape,
            grid_spec=pltpu.PrefetchScalarGridSpec(
                num_scalar_prefetch=0,
                grid=(n_blocks,),
                in_specs=in_specs,
                out_specs=out_spec),
            compiler_params=pltpu.CompilerParams(
                dimension_semantics=("parallel",),
                vmem_limit_bytes=vmem_limit),
        )(x_in, w1_t, w2, wt_col, bt)
        if packed:
            out = out.reshape(Bp, D)
        return out if Bp == B else out[:B]

    try:
        return run(packed_out, True)
    except Exception:
        # Robust fallback to the previously-validated layout (plain (TB, D)
        # output, default-buffered weights) if this jax/Mosaic version rejects
        # pl.Buffered(1) or the packed lane-dense store.
        return run(False, False)


def time_att_reference(x, w1_t, w2, wt_col, bt):
    """Pure-JAX reference mirroring the PyTorch forward, for verification."""
    h = jnp.tanh(jnp.einsum("btd,de->bte", x, w1_t))
    y = jnp.einsum("bte,e->bt", h, w2[0])[..., None]                 # (B, T, 1)
    beta = jax.nn.softmax(y, axis=1)
    c = beta * x                                                     # (B, T, D)
    # time(c.transpose(-1,-2)): (B, D, T) @ (T, 1) + bias -> (B, D, 1) -> squeeze
    out = jnp.einsum("btd,t->bd", c, wt_col[:, 0]) + bt[0, 0]
    return out


if __name__ == "__main__":
    B, T, D = 8, 16, 32          # batch=8, time=16 (module default), dims=32
    key = jax.random.PRNGKey(0)
    kx, k1, k2, k3, k4 = jax.random.split(key, 5)

    x = jax.random.normal(kx, (B, T, D), dtype=jnp.float32)

    # Deterministic synthetic parameters (shapes per Time_att.__init__).
    bound1 = 1.0 / (D ** 0.5)
    bound_t = 1.0 / (T ** 0.5)
    w1_t = jax.random.uniform(k1, (D, D), jnp.float32, -bound1, bound1)      # linear1.weight.T
    w2 = jax.random.uniform(k2, (1, D), jnp.float32, -bound1, bound1)        # linear2.weight
    wt_col = jax.random.uniform(k3, (T, 1), jnp.float32, -bound_t, bound_t)  # time.weight.T
    bt = jax.random.uniform(k4, (1, 1), jnp.float32, -bound_t, bound_t)      # time.bias

    out = jax.block_until_ready(time_att(x, w1_t, w2, wt_col, bt))
    ref = time_att_reference(x, w1_t, w2, wt_col, bt)

    assert out.shape == (B, D), out.shape
    # Tolerance accommodates the EUP approximate reciprocal in the softmax.
    assert jnp.allclose(out, ref, atol=5e-3, rtol=5e-3), "mismatch vs reference"
    print("KERNEL_OK")
</pallas_src>

<mosaic_0001>
module attributes {stable_mosaic.version = 11 : i64} {
  func.func @time_att_kernel(%arg0: i32, %arg1: memref<8x16x32xf32, #tpu.memory_space<vmem>>, %arg2: memref<32x32xf32, #tpu.memory_space<vmem>>, %arg3: memref<1x32xf32, #tpu.memory_space<vmem>>, %arg4: memref<16x1xf32, #tpu.memory_space<vmem>>, %arg5: memref<1x1xf32, #tpu.memory_space<smem>>, %arg6: memref<1x256xf32, #tpu.memory_space<vmem>>) attributes {dimension_semantics = [#tpu.dimension_semantics<parallel>], iteration_bounds = array<i64: 1>, scalar_prefetch = 0 : i64, scratch_operands = 0 : i64, tpu.core_type = #tpu.core_type<tc>, window_params = [{transform_indices = @transform_0, window_bounds = array<i64: 8, 16, 32>}, {pipeline_mode = #tpu.pipeline_mode<synchronous>, transform_indices = @transform_1, window_bounds = array<i64: 32, 32>}, {pipeline_mode = #tpu.pipeline_mode<synchronous>, transform_indices = @transform_2, window_bounds = array<i64: 1, 32>}, {pipeline_mode = #tpu.pipeline_mode<synchronous>, transform_indices = @transform_3, window_bounds = array<i64: 16, 1>}, {transform_indices = @transform_4, window_bounds = array<i64: 1, 1>}, {transform_indices = @transform_5, window_bounds = array<i64: 1, 256>}]} {
    %c0 = arith.constant 0 : index
    %c0_0 = arith.constant 0 : index
    %c0_1 = arith.constant 0 : index
    %0 = vector.load %arg1[%c0, %c0_0, %c0_1] : memref<8x16x32xf32, #tpu.memory_space<vmem>>, vector<8x16x32xf32>
    %c0_2 = arith.constant 0 : index
    %c0_3 = arith.constant 0 : index
    %1 = vector.load %arg2[%c0_2, %c0_3] : memref<32x32xf32, #tpu.memory_space<vmem>>, vector<32x32xf32>
    %2 = vector.shape_cast %0 : vector<8x16x32xf32> to vector<128x32xf32>
    %cst = arith.constant dense<0.000000e+00> : vector<128x32xf32>
    %3 = tpu.matmul %2, %1, %cst {dimension_numbers = #tpu.dot_dimension_numbers<[1], [0], [0], [1], [0, 0, 1, 1], [], []>} : vector<128x32xf32>, vector<32x32xf32>, vector<128x32xf32> -> vector<128x32xf32>
    %4 = vector.shape_cast %3 : vector<128x32xf32> to vector<8x16x32xf32>
    %5 = math.tanh %4 : vector<8x16x32xf32>
    %c0_4 = arith.constant 0 : index
    %c0_5 = arith.constant 0 : index
    %6 = vector.load %arg3[%c0_4, %c0_5] : memref<1x32xf32, #tpu.memory_space<vmem>>, vector<1x32xf32>
    %7 = vector.shape_cast %6 : vector<1x32xf32> to vector<1x1x32xf32>
    %8 = vector.broadcast %7 : vector<1x1x32xf32> to vector<8x16x32xf32>
    %9 = arith.mulf %5, %8 : vector<8x16x32xf32>
    %cst_6 = arith.constant dense<0.000000e+00> : vector<8x16xf32>
    %10 = vector.multi_reduction <add>, %9, %cst_6 [2] : vector<8x16x32xf32> to vector<8x16xf32>
    %11 = vector.shape_cast %10 : vector<8x16xf32> to vector<8x16x1xf32>
    %cst_7 = arith.constant dense<0xFF800000> : vector<8x1xf32>
    %12 = vector.multi_reduction <maximumf>, %11, %cst_7 [1] : vector<8x16x1xf32> to vector<8x1xf32>
    %13 = vector.shape_cast %12 : vector<8x1xf32> to vector<8x1x1xf32>
    %14 = vector.broadcast %13 : vector<8x1x1xf32> to vector<8x16x1xf32>
    %15 = arith.subf %11, %14 : vector<8x16x1xf32>
    %16 = math.exp %15 : vector<8x16x1xf32>
    %cst_8 = arith.constant dense<0.000000e+00> : vector<8x1xf32>
    %17 = vector.multi_reduction <add>, %16, %cst_8 [1] : vector<8x16x1xf32> to vector<8x1xf32>
    %18 = vector.shape_cast %17 : vector<8x1xf32> to vector<8x1x1xf32>
    %19 = tpu.reciprocal %18 {approx = true} : vector<8x1x1xf32> -> vector<8x1x1xf32>
    %20 = vector.broadcast %19 : vector<8x1x1xf32> to vector<8x16x1xf32>
    %21 = arith.mulf %16, %20 : vector<8x16x1xf32>
    %c0_9 = arith.constant 0 : index
    %c0_10 = arith.constant 0 : index
    %22 = vector.load %arg4[%c0_9, %c0_10] : memref<16x1xf32, #tpu.memory_space<vmem>>, vector<16x1xf32>
    %23 = vector.shape_cast %22 : vector<16x1xf32> to vector<1x16x1xf32>
    %24 = vector.broadcast %23 : vector<1x16x1xf32> to vector<8x16x1xf32>
    %25 = arith.mulf %21, %24 : vector<8x16x1xf32>
    %26 = vector.broadcast %25 : vector<8x16x1xf32> to vector<8x16x32xf32>
    %27 = arith.mulf %26, %0 : vector<8x16x32xf32>
    %cst_11 = arith.constant dense<0.000000e+00> : vector<8x32xf32>
    %28 = vector.multi_reduction <add>, %27, %cst_11 [1] : vector<8x16x32xf32> to vector<8x32xf32>
    %c0_12 = arith.constant 0 : index
    %c0_13 = arith.constant 0 : index
    %29 = memref.load %arg5[%c0_12, %c0_13] : memref<1x1xf32, #tpu.memory_space<smem>>
    %30 = vector.broadcast %29 : f32 to vector<8x32xf32>
    %31 = arith.addf %28, %30 : vector<8x32xf32>
    %32 = vector.shape_cast %31 : vector<8x32xf32> to vector<1x256xf32>
    %c0_14 = arith.constant 0 : index
    %c0_15 = arith.constant 0 : index
    %33 = vector.load %arg6[%c0_14, %c0_15] : memref<1x256xf32, #tpu.memory_space<vmem>>, vector<1x256xf32>
    tpu.vector_store %arg6[%c0_14, %c0_15], %32 {strides = array<i32>} : memref<1x256xf32, #tpu.memory_space<vmem>>, vector<1x256xf32>,
    return
  }
  func.func @transform_0(%arg0: i32) -> (i32, i32, i32) {
    %c0_i32 = arith.constant 0 : i32
    %c0_i32_0 = arith.constant 0 : i32
    %c0_i32_1 = arith.constant 0 : i32
    return %arg0, %c0_i32, %c0_i32_0 : i32, i32, i32
  }
  func.func @transform_1(%arg0: i32) -> (i32, i32) {
    %c0_i32 = arith.constant 0 : i32
    %c0_i32_0 = arith.constant 0 : i32
    %c0_i32_1 = arith.constant 0 : i32
    return %c0_i32, %c0_i32_0 : i32, i32
  }
  func.func @transform_2(%arg0: i32) -> (i32, i32) {
    %c0_i32 = arith.constant 0 : i32
    %c0_i32_0 = arith.constant 0 : i32
    %c0_i32_1 = arith.constant 0 : i32
    return %c0_i32, %c0_i32_0 : i32, i32
  }
  func.func @transform_3(%arg0: i32) -> (i32, i32) {
    %c0_i32 = arith.constant 0 : i32
    %c0_i32_0 = arith.constant 0 : i32
    %c0_i32_1 = arith.constant 0 : i32
    return %c0_i32, %c0_i32_0 : i32, i32
  }
  func.func @transform_4(%arg0: i32) -> (i32, i32) {
    %c0_i32 = arith.constant 0 : i32
    %c0_i32_0 = arith.constant 0 : i32
    %c0_i32_1 = arith.constant 0 : i32
    return %c0_i32, %c0_i32_0 : i32, i32
  }
  func.func @transform_5(%arg0: i32) -> (i32, i32) {
    %c0_i32 = arith.constant 0 : i32
    %c0_i32_0 = arith.constant 0 : i32
    return %arg0, %c0_i32 : i32, i32
  }
}

module attributes {stable_mosaic.version = 11 : i64} {
  func.func @time_att_kernel(%arg0: i32, %arg1: memref<8x16x32xf32, #tpu.memory_space<vmem>>, %arg2: memref<32x32xf32, #tpu.memory_space<vmem>>, %arg3: memref<1x32xf32, #tpu.memory_space<vmem>>, %arg4: memref<16x1xf32, #tpu.memory_space<vmem>>, %arg5: memref<1x1xf32, #tpu.memory_space<smem>>, %arg6: memref<8x32xf32, #tpu.memory_space<vmem>>) attributes {dimension_semantics = [#tpu.dimension_semantics<parallel>], iteration_bounds = array<i64: 1>, scalar_prefetch = 0 : i64, scratch_operands = 0 : i64, tpu.core_type = #tpu.core_type<tc>, window_params = [{transform_indices = @transform_0, window_bounds = array<i64: 8, 16, 32>}, {pipeline_mode = #tpu.pipeline_mode<synchronous>, transform_indices = @transform_1, window_bounds = array<i64: 32, 32>}, {pipeline_mode = #tpu.pipeline_mode<synchronous>, transform_indices = @transform_2, window_bounds = array<i64: 1, 32>}, {pipeline_mode = #tpu.pipeline_mode<synchronous>, transform_indices = @transform_3, window_bounds = array<i64: 16, 1>}, {transform_indices = @transform_4, window_bounds = array<i64: 1, 1>}, {transform_indices = @transform_5, window_bounds = array<i64: 8, 32>}]} {
    %c0 = arith.constant 0 : index
    %c0_0 = arith.constant 0 : index
    %c0_1 = arith.constant 0 : index
    %0 = vector.load %arg1[%c0, %c0_0, %c0_1] : memref<8x16x32xf32, #tpu.memory_space<vmem>>, vector<8x16x32xf32>
    %c0_2 = arith.constant 0 : index
    %c0_3 = arith.constant 0 : index
    %1 = vector.load %arg2[%c0_2, %c0_3] : memref<32x32xf32, #tpu.memory_space<vmem>>, vector<32x32xf32>
    %2 = vector.shape_cast %0 : vector<8x16x32xf32> to vector<128x32xf32>
    %cst = arith.constant dense<0.000000e+00> : vector<128x32xf32>
    %3 = tpu.matmul %2, %1, %cst {dimension_numbers = #tpu.dot_dimension_numbers<[1], [0], [0], [1], [0, 0, 1, 1], [], []>} : vector<128x32xf32>, vector<32x32xf32>, vector<128x32xf32> -> vector<128x32xf32>
    %4 = vector.shape_cast %3 : vector<128x32xf32> to vector<8x16x32xf32>
    %5 = math.tanh %4 : vector<8x16x32xf32>
    %c0_4 = arith.constant 0 : index
    %c0_5 = arith.constant 0 : index
    %6 = vector.load %arg3[%c0_4, %c0_5] : memref<1x32xf32, #tpu.memory_space<vmem>>, vector<1x32xf32>
    %7 = vector.shape_cast %6 : vector<1x32xf32> to vector<1x1x32xf32>
    %8 = vector.broadcast %7 : vector<1x1x32xf32> to vector<8x16x32xf32>
    %9 = arith.mulf %5, %8 : vector<8x16x32xf32>
    %cst_6 = arith.constant dense<0.000000e+00> : vector<8x16xf32>
    %10 = vector.multi_reduction <add>, %9, %cst_6 [2] : vector<8x16x32xf32> to vector<8x16xf32>
    %11 = vector.shape_cast %10 : vector<8x16xf32> to vector<8x16x1xf32>
    %cst_7 = arith.constant dense<0xFF800000> : vector<8x1xf32>
    %12 = vector.multi_reduction <maximumf>, %11, %cst_7 [1] : vector<8x16x1xf32> to vector<8x1xf32>
    %13 = vector.shape_cast %12 : vector<8x1xf32> to vector<8x1x1xf32>
    %14 = vector.broadcast %13 : vector<8x1x1xf32> to vector<8x16x1xf32>
    %15 = arith.subf %11, %14 : vector<8x16x1xf32>
    %16 = math.exp %15 : vector<8x16x1xf32>
    %cst_8 = arith.constant dense<0.000000e+00> : vector<8x1xf32>
    %17 = vector.multi_reduction <add>, %16, %cst_8 [1] : vector<8x16x1xf32> to vector<8x1xf32>
    %18 = vector.shape_cast %17 : vector<8x1xf32> to vector<8x1x1xf32>
    %19 = tpu.reciprocal %18 {approx = true} : vector<8x1x1xf32> -> vector<8x1x1xf32>
    %20 = vector.broadcast %19 : vector<8x1x1xf32> to vector<8x16x1xf32>
    %21 = arith.mulf %16, %20 : vector<8x16x1xf32>
    %c0_9 = arith.constant 0 : index
    %c0_10 = arith.constant 0 : index
    %22 = vector.load %arg4[%c0_9, %c0_10] : memref<16x1xf32, #tpu.memory_space<vmem>>, vector<16x1xf32>
    %23 = vector.shape_cast %22 : vector<16x1xf32> to vector<1x16x1xf32>
    %24 = vector.broadcast %23 : vector<1x16x1xf32> to vector<8x16x1xf32>
    %25 = arith.mulf %21, %24 : vector<8x16x1xf32>
    %26 = vector.broadcast %25 : vector<8x16x1xf32> to vector<8x16x32xf32>
    %27 = arith.mulf %26, %0 : vector<8x16x32xf32>
    %cst_11 = arith.constant dense<0.000000e+00> : vector<8x32xf32>
    %28 = vector.multi_reduction <add>, %27, %cst_11 [1] : vector<8x16x32xf32> to vector<8x32xf32>
    %c0_12 = arith.constant 0 : index
    %c0_13 = arith.constant 0 : index
    %29 = memref.load %arg5[%c0_12, %c0_13] : memref<1x1xf32, #tpu.memory_space<smem>>
    %30 = vector.broadcast %29 : f32 to vector<8x32xf32>
    %31 = arith.addf %28, %30 : vector<8x32xf32>
    %c0_14 = arith.constant 0 : index
    %c0_15 = arith.constant 0 : index
    %32 = vector.load %arg6[%c0_14, %c0_15] : memref<8x32xf32, #tpu.memory_space<vmem>>, vector<8x32xf32>
    tpu.vector_store %arg6[%c0_14, %c0_15], %31 {strides = array<i32>} : memref<8x32xf32, #tpu.memory_space<vmem>>, vector<8x32xf32>,
    return
  }
  func.func @transform_0(%arg0: i32) -> (i32, i32, i32) {
    %c0_i32 = arith.constant 0 : i32
    %c0_i32_0 = arith.constant 0 : i32
    %c0_i32_1 = arith.constant 0 : i32
    return %arg0, %c0_i32, %c0_i32_0 : i32, i32, i32
  }
  func.func @transform_1(%arg0: i32) -> (i32, i32) {
    %c0_i32 = arith.constant 0 : i32
    %c0_i32_0 = arith.constant 0 : i32
    %c0_i32_1 = arith.constant 0 : i32
    return %c0_i32, %c0_i32_0 : i32, i32
  }
  func.func @transform_2(%arg0: i32) -> (i32, i32) {
    %c0_i32 = arith.constant 0 : i32
    %c0_i32_0 = arith.constant 0 : i32
    %c0_i32_1 = arith.constant 0 : i32
    return %c0_i32, %c0_i32_0 : i32, i32
  }
  func.func @transform_3(%arg0: i32) -> (i32, i32) {
    %c0_i32 = arith.constant 0 : i32
    %c0_i32_0 = arith.constant 0 : i32
    %c0_i32_1 = arith.constant 0 : i32
    return %c0_i32, %c0_i32_0 : i32, i32
  }
  func.func @transform_4(%arg0: i32) -> (i32, i32) {
    %c0_i32 = arith.constant 0 : i32
    %c0_i32_0 = arith.constant 0 : i32
    %c0_i32_1 = arith.constant 0 : i32
    return %c0_i32, %c0_i32_0 : i32, i32
  }
  func.func @transform_5(%arg0: i32) -> (i32, i32) {
    %c0_i32 = arith.constant 0 : i32
    %c0_i32_0 = arith.constant 0 : i32
    return %arg0, %c0_i32 : i32, i32
  }
}

</mosaic_0001>

<bundles_post_ra>
// kernel: tpu_custom_call.1
= control target key start
LH: loop header
LB: loop body
LE: loop exit
PB: predicated region body
PF: predicated region fallthrough
CT: control target
= control target key end

     0   :  { %11 = vsyncpa [#allocation4], 0  ;;  %s1347_s0 = inlined_call_operand.hbm [shape: f32[8,16,32], index: 0, kind: input, shape index: {}]   ;;  %s1348_s1 = inlined_call_operand.hbm [shape: f32[32,32], index: 1, kind: input, shape index: {}]   ;;  %s1349_s2 = inlined_call_operand.vmem [shape: f32[1,32], index: 2, kind: input, shape index: {}]   ;;  %s1350_s3 = inlined_call_operand.vmem [shape: f32[16,1], index: 3, kind: input, shape index: {}]   ;;  %s1351_s4 = inlined_call_operand.<no memory space> [shape: f32[1,1], index: 4, kind: input, shape index: {}]   ;;  %s1352_s5 = inlined_call_operand.hbm [shape: f32[8,32], index: 5, kind: output, shape index: {}]  }
   0x1   :  { %12 = vsyncpa [#allocation7], 0 }
   0x2   :  { %13 = vsyncpa [#allocation5], 0  ;;  %s1012_s18 = smov [#allocation3]   ;;  %s940_s22 = scalar_lea.hbm %s1347_s0, 2048 }
   0x3   :  { %s19_s19 = sshll.u32 %s1012_s18, 4  ;;  %p941_p0 = scmp.ne.s32.totalorder %s1347_s0, %s940_s22  ;;  %s20_s19 = int_to_ptr.vmem [resolvable:$true] %s19_s19 }
   0x4   :  { %p944_p1 = scmp.lt.u32.totalorder %s940_s22, %s1347_s0 }
   0x6   :  { %p946_p2 = pnand %p944_p1, %p941_p0 }
   0x8   :  { %949 = shalt.err (!%p946_p2)
}
   0x9   :  { %s950_s27 = scalar_lea.vmem %s20_s19, 2048  ;;  %p955_p4 = scmp.lt.s32.totalorder %s20_s19, %s20_s19 }
   0xa   :  { %p951_p3 = scmp.ne.s32.totalorder %s20_s19, %s950_s27  ;;  %p956_p5 = scmp.lt.s32.totalorder %s950_s27, %s950_s27 }
   0xc   :  { %p957_p6 = por %p956_p5, %p955_p4 }
   0xe   :  { %p958_p7 = pnand %p957_p6, %p951_p3 }
  0x10   :  { %961 = shalt.err (!%p958_p7)
}
  0x11   :  { %s1013_s28 = smov 128   ;;  %s1014_s29 = smov 8  }
  0x12   :  { %25 = dma.hbm_to_vmem [thread:$0]  %s1347_s0, 2048, %s20_s19, [#allocation4], %s1013_s28, %s1013_s28, %s1014_s29  }
  0x13   :  { %s1015_s7 = smov [#allocation6]   ;;  %s962_s11 = scalar_lea.hbm %s1348_s1, 512 }
  0x14   :  { %s31_s8 = sshll.u32 %s1015_s7, 4  ;;  %p963_p8 = scmp.ne.s32.totalorder %s1348_s1, %s962_s11  ;;  %s32_s8 = int_to_ptr.vmem [resolvable:$true] %s31_s8 }
  0x15   :  { %p966_p9 = scmp.lt.u32.totalorder %s962_s11, %s1348_s1 }
  0x17   :  { %p968_p10 = pnand %p966_p9, %p963_p8 }
  0x19   :  { %971 = shalt.err (!%p968_p10)
}
  0x1a   :  { %s972_s16 = scalar_lea.vmem %s32_s8, 512  ;;  %p977_p12 = scmp.lt.s32.totalorder %s32_s8, %s32_s8 }
  0x1b   :  { %p973_p11 = scmp.ne.s32.totalorder %s32_s8, %s972_s16  ;;  %p978_p13 = scmp.lt.s32.totalorder %s972_s16, %s972_s16 }
  0x1d   :  { %p979_p0 = por %p978_p13, %p977_p12 }
  0x1f   :  { %p980_p1 = pnand %p979_p0, %p973_p11 }
  0x21   :  { %983 = shalt.err (!%p980_p1)
}
  0x22   :  { %37 = dma.hbm_to_vmem [thread:$0]  %s1348_s1, 512, %s32_s8, [#allocation7], %s1013_s28, %s1013_s28, %s1014_s29  }
  0x23   :  { %1006 = dma.done.wait [#allocation4], 2048  }
  0x24   :  { %1007 = vsyncadd [#allocation4], 4294965248 }
  0x25   :  { %1008 = dma.done.wait [#allocation7], 512  }
  0x26   :  { %1009 = vsyncadd [#allocation7], 4294966784  ;;  %vm70_vm0 = vcmask 261120   ;;  %v66_v0 = vld [vmem:[#allocation6] sm:$0xff]  ;;  %v67_v1 = vld [vmem:[#allocation6 + $0x8] sm:$0xff]  ;;  %vm739_vm1 = vcmask 1041409  }
  0x27   :  { %v68_v2 = vld [vmem:[#allocation6 + $0x10] sm:$0xff]  ;;  %v840_v3 = vpack.c.bf16 %v67_v1, %v66_v0  ;;  %v69_v4 = vld [vmem:[#allocation6 + $0x18] sm:$0xff]  ;;  %v1072_v5 = vld [vmem:[#allocation3] sm:$0xff]  ;;  %vm741_vm2 = vcmask 1042434   ;;  %vm743_vm3 = vcmask 1043459   ;;  %vm745_vm4 = vcmask 1044484  }
  0x28   :  { %v1074_v6 = vld [vmem:[#allocation3 + $0x40] sm:$0xff]  ;;  %v844_v7 = vpack.c.bf16 %v69_v4, %v68_v2  ;;  %816 = vmatprep.mubr.msk.f32.mxu0 %vm70_vm0, %v1072_v5  ;;  %v1080_v8 = vld [vmem:[#allocation3 + $0x8] sm:$0xff]  ;;  %v1084_v10 = vld [vmem:[#allocation3 + $0x10] sm:$0xff]  ;;  %vm747_vm5 = vcmask 1045509   ;;  %vm749_vm6 = vcmask 1046534   ;;  %vm751_vm7 = vcmask 1047559  }
  0x29   :  { %828 = vmatprep.mubr.msk.f32.mxu1 %vm70_vm0, %v1074_v6  ;;  %841 = vmatprep.subr.bf16.mxu0 %v840_v3  ;;  %v1082_v9 = vld [vmem:[#allocation3 + $0x48] sm:$0xff]  ;;  %v1086_v11 = vld [vmem:[#allocation3 + $0x50] sm:$0xff]  ;;  %v1094_v12 = vld [vmem:[#allocation3 + $0x18] sm:$0xff] }
  0x2a   :  { %848 = vmatprep.subr.bf16.mxu1 %v840_v3  ;;  %843 = vmatpush3.bf16.msra.mxu0 %v840_v3  ;;  %v1098_v13 = vld [vmem:[#allocation3 + $0x58] sm:$0xff]  ;;  %v1100_v14 = vld [vmem:[#allocation3 + $0x20] sm:$0xff]  ;;  %v1110_v16 = vld [vmem:[#allocation3 + $0x28] sm:$0xff] }
  0x2b   :  { %850 = vmatpush3.bf16.msra.mxu1 %v840_v3  ;;  %845 = vmatprep.subr.bf16.mxu0 %v844_v7  ;;  %v1102_v15 = vld [vmem:[#allocation3 + $0x60] sm:$0xff]  ;;  %v1114_v17 = vld [vmem:[#allocation3 + $0x68] sm:$0xff]  ;;  %v1116_v18 = vld [vmem:[#allocation3 + $0x30] sm:$0xff] }
  0x2c   :  { %849 = vmatprep.subr.bf16.mxu1 %v844_v7  ;;  %v1118_v19 = vld [vmem:[#allocation3 + $0x70] sm:$0xff]  ;;  %v1126_v20 = vld [vmem:[#allocation3 + $0x38] sm:$0xff]  ;;  %v1139_v32 = vld [vmem:[%s1349_s2] ss:$0 sm:$0xff] }
  0x2d   :  { %v1130_v21 = vld [vmem:[#allocation3 + $0x78] sm:$0xff] }
  0x2e   :  { %847 = vmatpush3.bf16.msra.mxu0 %v844_v7 }
  0x2f   :  { %851 = vmatpush3.bf16.msra.mxu1 %v844_v7 }
  0x31   :  { %817 = vmatmul.mubr.msk.f32.vlgmr.msra.gmra.mrb[0].mxu0 %vm70_vm0, %v1080_v8 }
  0x32   :  { %829 = vmatmul.mubr.msk.f32.vlgmr.msra.gmra.mrb[0].mxu1 %vm70_vm0, %v1082_v9  ;;  %819 = vmatprep.mubr.msk.f32.mxu0 %vm70_vm0, %v1084_v10 }
  0x33   :  { %831 = vmatprep.mubr.msk.f32.mxu1 %vm70_vm0, %v1086_v11 }
  0x35   :  { %820 = vmatmul.mubr.msk.f32.gmra.mrb[2].mxu0 %vm70_vm0, %v1094_v12 }
  0x36   :  { %832 = vmatmul.mubr.msk.f32.gmra.mrb[2].mxu1 %vm70_vm0, %v1098_v13  ;;  %822 = vmatprep.mubr.msk.f32.mxu0 %vm70_vm0, %v1100_v14 }
  0x37   :  { %834 = vmatprep.mubr.msk.f32.mxu1 %vm70_vm0, %v1102_v15 }
  0x39   :  { %823 = vmatmul.mubr.msk.f32.gmra.mrb[4].mxu0 %vm70_vm0, %v1110_v16 }
  0x3a   :  { %835 = vmatmul.mubr.msk.f32.gmra.mrb[4].mxu1 %vm70_vm0, %v1114_v17  ;;  %825 = vmatprep.mubr.msk.f32.mxu0 %vm70_vm0, %v1116_v18 }
  0x3b   :  { %837 = vmatprep.mubr.msk.f32.mxu1 %vm70_vm0, %v1118_v19 }
  0x3d   :  { %826 = vmatmul.mubr.msk.f32.gmra.mrb[6].mxu0 %vm70_vm0, %v1126_v20 }
  0x3e   :  { %838 = vmatmul.mubr.msk.f32.gmra.mrb[6].mxu1 %vm70_vm0, %v1130_v21 }
 0x104   :  { %v818_v22 = vpop.f32.mrb[0].mxu0 }
 0x105   :  { %v830_v23 = vpop.f32.mrb[0].mxu1  ;;  %860 = vtanh.f32 %v818_v22  ;;  %v185_v24 = vpop.f32.mrb[1].mxu0 }
 0x106   :  { %v225_v25 = vpop.f32.mrb[1].mxu1  ;;  %862 = vtanh.f32 %v830_v23 }
 0x107   :  { %864 = vtanh.f32 %v185_v24 }
 0x108   :  { %866 = vtanh.f32 %v225_v25  ;;  %v821_v26 = vpop.f32.mrb[2].mxu0 }
 0x109   :  { %v833_v27 = vpop.f32.mrb[2].mxu1  ;;  %868 = vtanh.f32 %v821_v26  ;;  %v195_v28 = vpop.f32.mrb[3].mxu0 }
 0x10a   :  { %v235_v29 = vpop.f32.mrb[3].mxu1  ;;  %870 = vtanh.f32 %v833_v27 }
 0x10b   :  { %872 = vtanh.f32 %v235_v29 }
 0x10c   :  { %v824_v30 = vpop.f32.mrb[4].mxu0  ;;  %874 = vtanh.f32 %v195_v28 }
 0x10d   :  { %v836_v31 = vpop.f32.mrb[4].mxu1  ;;  %v205_v33 = vpop.f32.mrb[5].mxu0 }
 0x10e   :  { %v245_v34 = vpop.f32.mrb[5].mxu1  ;;  %876 = vtanh.f32 %v205_v33 }
 0x10f   :  { %v861_v35 = vpop.eup %860  ;;  %878 = vtanh.f32 %v824_v30 }
 0x110   :  { %v863_v36 = vpop.eup %862  ;;  %v288_v37 = vmul.f32 %v861_v35, %v1139_v32  ;;  %v827_v38 = vpop.f32.mrb[6].mxu0  ;;  %880 = vtanh.f32 %v245_v34 }
 0x111   :  { %v839_v39 = vpop.f32.mrb[6].mxu1  ;;  %v865_v40 = vpop.eup %864  ;;  %v296_v41 = vmul.f32 %v863_v36, %v1139_v32  ;;  %882 = vtanh.f32 %v836_v31 }
 0x112   :  { %v215_v42 = vpop.f32.mrb[7].mxu0  ;;  %v255_v43 = vpop.f32.mrb[7].mxu1  ;;  %v306_v45 = vsel %vm70_vm0, %v288_v37, 0.0  ;;  %v287_v46 = vmul.f32 %v865_v40, %v1139_v32  ;;  %v1016_v40 = vmov 0  }
 0x113   :  { %v867_v44 = vpop.eup %866  ;;  %v330_v48 = vsel %vm70_vm0, %v296_v41, 0.0  ;;  %307 = vadd.xlane.f32.xlu0 %v306_v45  ;;  %884 = vtanh.f32 %v215_v42  ;;  %859 = vset.pattern.permute.xlu1 %v1016_v40 }
 0x114   :  { %v869_v47 = vpop.eup %868  ;;  %331 = vadd.xlane.f32.xlu1 %v330_v48  ;;  %v303_v51 = vsel %vm70_vm0, %v287_v46, 0.0  ;;  %v295_v53 = vmul.f32 %v867_v44, %v1139_v32  ;;  %886 = vtanh.f32 %v827_v38  ;;  %858 = vset.pattern.permute.xlu0 %v1016_v40 }
 0x115   :  { %v290_v49 = vmul.f32 %v869_v47, %v1139_v32  ;;  %v871_v50 = vpop.eup %870  ;;  %888 = vtanh.f32 %v255_v43 }
 0x116   :  { %v298_v54 = vmul.f32 %v871_v50, %v1139_v32  ;;  %v873_v55 = vpop.eup %872  ;;  %v327_v60 = vsel %vm70_vm0, %v295_v53, 0.0  ;;  %890 = vtanh.f32 %v839_v39 }
 0x117   :  { %v312_v52 = vsel %vm70_vm0, %v290_v49, 0.0  ;;  %304 = vadd.xlane.f32.xlu0 %v303_v51  ;;  %v875_v56 = vpop.eup %874  ;;  %v297_v61 = vmul.f32 %v873_v55, %v1139_v32 }
 0x118   :  { %313 = vadd.xlane.f32.xlu1 %v312_v52  ;;  %v877_v57 = vpop.eup %876  ;;  %v336_v58 = vsel %vm70_vm0, %v298_v54, 0.0  ;;  %v289_v62 = vmul.f32 %v875_v56, %v1139_v32 }
 0x119   :  { %v879_v59 = vpop.eup %878  ;;  %v291_v63 = vmul.f32 %v877_v57, %v1139_v32  ;;  %v333_v3 = vsel %vm70_vm0, %v297_v61, 0.0 }
 0x11a   :  { %v881_v0 = vpop.eup %880  ;;  %v292_v1 = vmul.f32 %v879_v59, %v1139_v32  ;;  %v309_v4 = vsel %vm70_vm0, %v289_v62, 0.0 }
 0x11b   :  { %328 = vadd.xlane.f32.xlu0 %v327_v60  ;;  %v883_v2 = vpop.eup %882  ;;  %v315_v7 = vsel %vm70_vm0, %v291_v63, 0.0  ;;  %v299_v22 = vmul.f32 %v881_v0, %v1139_v32 }
 0x11c   :  { %337 = vadd.xlane.f32.xlu1 %v336_v58  ;;  %v318_v24 = vsel %vm70_vm0, %v292_v1, 0.0  ;;  %v300_v25 = vmul.f32 %v883_v2, %v1139_v32 }
 0x11d   :  { %v885_v23 = vpop.eup %884  ;;  %v339_v27 = vsel %vm70_vm0, %v299_v22, 0.0 }
 0x11e   :  { %v887_v26 = vpop.eup %886  ;;  %v293_v28 = vmul.f32 %v885_v23, %v1139_v32  ;;  %v342_v30 = vsel %vm70_vm0, %v300_v25, 0.0 }
 0x11f   :  { %334 = vadd.xlane.f32.xlu0 %v333_v3  ;;  %v889_v29 = vpop.eup %888  ;;  %v294_v31 = vmul.f32 %v887_v26, %v1139_v32 }
 0x120   :  { %310 = vadd.xlane.f32.xlu1 %v309_v4  ;;  %v891_v33 = vpop.eup %890  ;;  %v321_v34 = vsel %vm70_vm0, %v293_v28, 0.0  ;;  %v301_v35 = vmul.f32 %v889_v29, %v1139_v32 }
 0x121   :  { %v324_v36 = vsel %vm70_vm0, %v294_v31, 0.0  ;;  %v302_v37 = vmul.f32 %v891_v33, %v1139_v32 }
 0x122   :  { %v345_v38 = vsel %vm70_vm0, %v301_v35, 0.0 }
 0x123   :  { %316 = vadd.xlane.f32.xlu0 %v315_v7  ;;  %v348_v39 = vsel %vm70_vm0, %v302_v37, 0.0 }
 0x124   :  { %319 = vadd.xlane.f32.xlu1 %v318_v24 }
 0x127   :  { %340 = vadd.xlane.f32.xlu0 %v339_v27 }
 0x128   :  { %343 = vadd.xlane.f32.xlu1 %v342_v30 }
 0x12b   :  { %322 = vadd.xlane.f32.xlu0 %v321_v34 }
 0x12c   :  { %325 = vadd.xlane.f32.xlu1 %v324_v36 }
 0x12f   :  { %346 = vadd.xlane.f32.xlu0 %v345_v38 }
 0x130   :  { %349 = vadd.xlane.f32.xlu1 %v348_v39 }
 0x1a0   :  { %v308_v41 = vpop.xlane.xlu0 %307 }
 0x1a1   :  { %v332_v42 = vpop.xlane.xlu1 %331 }
 0x1a4   :  { %v305_v43 = vpop.xlane.xlu0 %304 }
 0x1a5   :  { %v351_v44 = vmax.f32 %v305_v43, %v308_v41  ;;  %v1173_v45 = vpop.xlane.xlu1 %313 }
 0x1a7   :  { %v352_v46 = vrot.slane %v351_v44, 4 }
 0x1a8   :  { %v329_v47 = vpop.xlane.xlu0 %328 }
 0x1a9   :  { %v353_v32 = vmax.f32 %v351_v44, %v352_v46  ;;  %v379_v48 = vmax.f32 %v329_v47, %v332_v42  ;;  %v338_v49 = vpop.xlane.xlu1 %337 }
 0x1ab   :  { %v354_v50 = vrot.slane %v353_v32, 2  ;;  %v380_v51 = vrot.slane %v379_v48, 4 }
 0x1ac   :  { %v335_v52 = vpop.xlane.xlu0 %334 }
 0x1ad   :  { %v355_v53 = vmax.f32 %v353_v32, %v354_v50  ;;  %v381_v54 = vmax.f32 %v379_v48, %v380_v51  ;;  %v386_v55 = vmax.f32 %v335_v52, %v338_v49  ;;  %v311_v56 = vpop.xlane.xlu1 %310 }
 0x1ae   :  { %v358_v57 = vmax.f32 %v311_v56, %v1173_v45 }
 0x1af   :  { %v356_v58 = vrot.slane %v355_v53, 1  ;;  %v382_v59 = vrot.slane %v381_v54, 2  ;;  %v387_v60 = vrot.slane %v386_v55, 4 }
 0x1b0   :  { %v359_v61 = vrot.slane %v358_v57, 4  ;;  %v1176_v62 = vpop.xlane.xlu0 %316 }
 0x1b1   :  { %v357_v63 = vmax.f32 %v355_v53, %v356_v58  ;;  %v383_v0 = vmax.f32 %v381_v54, %v382_v59  ;;  %v388_v1 = vmax.f32 %v386_v55, %v387_v60  ;;  %v1178_v2 = vpop.xlane.xlu1 %319 }
 0x1b2   :  { %v360_v3 = vmax.f32 %v358_v57, %v359_v61  ;;  %v365_v4 = vmax.f32 %v1176_v62, %v1178_v2 }
 0x1b3   :  { %v407_v7 = vsub.f32 %v305_v43, %v357_v63  ;;  %v408_v22 = vsub.f32 %v308_v41, %v357_v63  ;;  %v384_v23 = vrot.slane %v383_v0, 1  ;;  %v389_v24 = vrot.slane %v388_v1, 2 }
 0x1b4   :  { %v361_v25 = vrot.slane %v360_v3, 2  ;;  %v366_v26 = vrot.slane %v365_v4, 4  ;;  %v1182_v27 = vpop.xlane.xlu0 %340 }
 0x1b5   :  { %v423_v28 = vmul.f32 1.442695, %v407_v7  ;;  %v425_v29 = vmul.f32 1.442695, %v408_v22  ;;  %v385_v30 = vmax.f32 %v383_v0, %v384_v23  ;;  %v390_v31 = vmax.f32 %v388_v1, %v389_v24  ;;  %v1184_v33 = vpop.xlane.xlu1 %343 }
 0x1b6   :  { %v362_v34 = vmax.f32 %v360_v3, %v361_v25  ;;  %v367_v35 = vmax.f32 %v365_v4, %v366_v26  ;;  %v393_v36 = vmax.f32 %v1182_v27, %v1184_v33 }
 0x1b7   :  { %892 = vpow2.f32 %v423_v28  ;;  %v415_v37 = vsub.f32 %v329_v47, %v385_v30  ;;  %v416_v38 = vsub.f32 %v332_v42, %v385_v30  ;;  %v391_v39 = vrot.slane %v390_v31, 1 }
 0x1b8   :  { %894 = vpow2.f32 %v425_v29  ;;  %v363_v40 = vrot.slane %v362_v34, 1  ;;  %v368_v41 = vrot.slane %v367_v35, 2  ;;  %v394_v43 = vrot.slane %v393_v36, 4  ;;  %v1188_v44 = vpop.xlane.xlu0 %322 }
 0x1b9   :  { %v439_v46 = vmul.f32 1.442695, %v415_v37  ;;  %v441_v32 = vmul.f32 1.442695, %v416_v38  ;;  %v392_v48 = vmax.f32 %v390_v31, %v391_v39  ;;  %v1190_v50 = vpop.xlane.xlu1 %325 }
 0x1ba   :  { %v364_v51 = vmax.f32 %v362_v34, %v363_v40  ;;  %v369_v53 = vmax.f32 %v367_v35, %v368_v41  ;;  %v395_v54 = vmax.f32 %v393_v36, %v394_v43  ;;  %v372_v55 = vmax.f32 %v1188_v44, %v1190_v50 }
 0x1bb   :  { %896 = vpow2.f32 %v439_v46  ;;  %v417_v42 = vsub.f32 %v335_v52, %v392_v48  ;;  %v418_v47 = vsub.f32 %v338_v49, %v392_v48 }
 0x1bc   :  { %898 = vpow2.f32 %v441_v32  ;;  %v409_v57 = vsub.f32 %v311_v56, %v364_v51  ;;  %v410_v58 = vsub.f32 %v1173_v45, %v364_v51  ;;  %v370_v59 = vrot.slane %v369_v53, 1  ;;  %v1195_v60 = vpop.xlane.xlu0 %346 }
 0x1bd   :  { %v443_v61 = vmul.f32 1.442695, %v417_v42  ;;  %v445_v63 = vmul.f32 1.442695, %v418_v47  ;;  %v396_v0 = vrot.slane %v395_v54, 2  ;;  %v373_v1 = vrot.slane %v372_v55, 4  ;;  %v1197_v3 = vpop.xlane.xlu1 %349 }
 0x1be   :  { %v427_v4 = vmul.f32 1.442695, %v409_v57  ;;  %v429_v7 = vmul.f32 1.442695, %v410_v58  ;;  %v371_v22 = vmax.f32 %v369_v53, %v370_v59  ;;  %v400_v52 = vmax.f32 %v1195_v60, %v1197_v3 }
 0x1bf   :  { %900 = vpow2.f32 %v443_v61  ;;  %v397_v49 = vmax.f32 %v395_v54, %v396_v0  ;;  %v374_v56 = vmax.f32 %v372_v55, %v373_v1 }
 0x1c0   :  { %902 = vpow2.f32 %v445_v63  ;;  %v411_v45 = vsub.f32 %v1176_v62, %v371_v22  ;;  %v412_v23 = vsub.f32 %v1178_v2, %v371_v22  ;;  %v401_v24 = vrot.slane %v400_v52, 4 }
 0x1c1   :  { %v1203_v25 = vpop.eup %892  ;;  %904 = vpow2.f32 %v427_v4  ;;  %v398_v26 = vrot.slane %v397_v49, 1  ;;  %v375_v28 = vrot.slane %v374_v56, 2 }
 0x1c2   :  { %v1205_v29 = vpop.eup %894  ;;  %906 = vpow2.f32 %v429_v7  ;;  %v431_v30 = vmul.f32 1.442695, %v411_v45  ;;  %v433_v31 = vmul.f32 1.442695, %v412_v23  ;;  %v402_v34 = vmax.f32 %v400_v52, %v401_v24 }
 0x1c3   :  { %v455_v35 = vadd.f32 %v1205_v29, %v1203_v25  ;;  %v399_v36 = vmax.f32 %v397_v49, %v398_v26  ;;  %v376_v37 = vmax.f32 %v374_v56, %v375_v28 }
 0x1c4   :  { %908 = vpow2.f32 %v431_v30  ;;  %v403_v62 = vrot.slane %v402_v34, 2 }
 0x1c5   :  { %v1209_v2 = vpop.eup %896  ;;  %v456_v38 = vrot.slane %v455_v35, 4  ;;  %910 = vpow2.f32 %v433_v31  ;;  %v419_v39 = vsub.f32 %v1182_v27, %v399_v36  ;;  %v420_v40 = vsub.f32 %v1184_v33, %v399_v36 }
 0x1c6   :  { %v1213_v41 = vpop.eup %898  ;;  %v377_v43 = vrot.slane %v376_v37, 1  ;;  %v404_v46 = vmax.f32 %v402_v34, %v403_v62 }
 0x1c7   :  { %v457_v32 = vadd.f32 %v456_v38, %v455_v35  ;;  %v483_v48 = vadd.f32 %v1213_v41, %v1209_v2  ;;  %v447_v51 = vmul.f32 1.442695, %v419_v39  ;;  %v449_v53 = vmul.f32 1.442695, %v420_v40 }
 0x1c8   :  { %v378_v54 = vmax.f32 %v376_v37, %v377_v43  ;;  %v405_v55 = vrot.slane %v404_v46, 1 }
 0x1c9   :  { %v1217_v42 = vpop.eup %900  ;;  %v458_v47 = vrot.slane %v457_v32, 2  ;;  %v484_v57 = vrot.slane %v483_v48, 4  ;;  %912 = vpow2.f32 %v447_v51 }
 0x1ca   :  { %v1219_v27 = vpop.eup %902  ;;  %914 = vpow2.f32 %v449_v53  ;;  %v413_v33 = vsub.f32 %v1188_v44, %v378_v54  ;;  %v414_v58 = vsub.f32 %v1190_v50, %v378_v54  ;;  %v406_v59 = vmax.f32 %v404_v46, %v405_v55 }
 0x1cb   :  { %v1223_v61 = vpop.eup %904  ;;  %v459_v63 = vadd.f32 %v458_v47, %v457_v32  ;;  %v485_v0 = vadd.f32 %v484_v57, %v483_v48  ;;  %v490_v1 = vadd.f32 %v1219_v27, %v1217_v42 }
 0x1cc   :  { %v1227_v4 = vpop.eup %906  ;;  %v435_v7 = vmul.f32 1.442695, %v413_v33  ;;  %v437_v22 = vmul.f32 1.442695, %v414_v58  ;;  %v421_v52 = vsub.f32 %v1195_v60, %v406_v59  ;;  %v422_v49 = vsub.f32 %v1197_v3, %v406_v59 }
 0x1cd   :  { %v486_v56 = vrot.slane %v485_v0, 2  ;;  %v491_v44 = vrot.slane %v490_v1, 4  ;;  %v462_v50 = vadd.f32 %v1227_v4, %v1223_v61  ;;  %v460_v45 = vrot.slane %v459_v63, 1 }
 0x1ce   :  { %v1233_v23 = vpop.eup %908  ;;  %916 = vpow2.f32 %v435_v7  ;;  %v451_v24 = vmul.f32 1.442695, %v421_v52  ;;  %v453_v26 = vmul.f32 1.442695, %v422_v49 }
 0x1cf   :  { %v1235_v28 = vpop.eup %910  ;;  %v487_v30 = vadd.f32 %v486_v56, %v485_v0  ;;  %v492_v31 = vadd.f32 %v491_v44, %v490_v1  ;;  %v463_v34 = vrot.slane %v462_v50, 4  ;;  %918 = vpow2.f32 %v437_v22 }
 0x1d0   :  { %v469_v60 = vadd.f32 %v1235_v28, %v1233_v23  ;;  %920 = vpow2.f32 %v451_v24  ;;  %v461_v3 = vadd.f32 %v460_v45, %v459_v63  ;;  %v1260_v45 = vld [vmem:[%s1350_s3 + $0x8] sm:$0xff]  ;;  %v1265_v24 = vld [vmem:[%s1350_s3] sm:$0xff] }
 0x1d1   :  { %v493_v35 = vrot.slane %v492_v31, 2  ;;  %v464_v36 = vadd.f32 %v463_v34, %v462_v50  ;;  %922 = vpow2.f32 %v453_v26  ;;  %v488_v37 = vrot.slane %v487_v30, 1 }
 0x1d2   :  { %v470_v62 = vrot.slane %v469_v60, 4  ;;  %924 = vrcp.f32 %v461_v3 }
 0x1d3   :  { %v1239_v38 = vpop.eup %912  ;;  %v494_v39 = vadd.f32 %v493_v35, %v492_v31  ;;  %v465_v40 = vrot.slane %v464_v36, 2  ;;  %v489_v43 = vadd.f32 %v488_v37, %v487_v30 }
 0x1d4   :  { %v1241_v46 = vpop.eup %914  ;;  %v471_v32 = vadd.f32 %v470_v62, %v469_v60 }
 0x1d5   :  { %v466_v48 = vadd.f32 %v465_v40, %v464_v36  ;;  %v497_v51 = vadd.f32 %v1241_v46, %v1239_v38  ;;  %926 = vrcp.f32 %v489_v43  ;;  %v495_v53 = vrot.slane %v494_v39, 1 }
 0x1d6   :  { %v472_v54 = vrot.slane %v471_v32, 2 }
 0x1d7   :  { %v498_v55 = vrot.slane %v497_v51, 4  ;;  %v467_v47 = vrot.slane %v466_v48, 1  ;;  %v496_v57 = vadd.f32 %v495_v53, %v494_v39 }
 0x1d8   :  { %v1245_v33 = vpop.eup %916  ;;  %v473_v58 = vadd.f32 %v472_v54, %v471_v32 }
 0x1d9   :  { %v1247_v59 = vpop.eup %918  ;;  %v499_v63 = vadd.f32 %v498_v55, %v497_v51  ;;  %v468_v0 = vadd.f32 %v467_v47, %v466_v48  ;;  %928 = vrcp.f32 %v496_v57 }
 0x1da   :  { %v1249_v1 = vpop.eup %920  ;;  %v476_v7 = vadd.f32 %v1247_v59, %v1245_v33  ;;  %v474_v22 = vrot.slane %v473_v58, 1 }
 0x1db   :  { %v1253_v52 = vpop.eup %922  ;;  %v500_v49 = vrot.slane %v499_v63, 2  ;;  %930 = vrcp.f32 %v468_v0 }
 0x1dc   :  { %v925_v56 = vpop.eup %924  ;;  %v477_v44 = vrot.slane %v476_v7, 4  ;;  %v504_v50 = vadd.f32 %v1253_v52, %v1249_v1  ;;  %v475_v3 = vadd.f32 %v474_v22, %v473_v58 }
 0x1dd   :  { %v501_v26 = vadd.f32 %v500_v49, %v499_v63  ;;  %v520_v30 = vmul.f32 %v925_v56, %v1205_v29  ;;  %v519_v31 = vmul.f32 %v925_v56, %v1203_v25 }
 0x1de   :  { %v478_v34 = vadd.f32 %v477_v44, %v476_v7  ;;  %v505_v60 = vrot.slane %v504_v50, 4  ;;  %932 = vrcp.f32 %v475_v3 }
 0x1df   :  { %v927_v35 = vpop.eup %926  ;;  %v538_v36 = vmul.f32 %v1260_v45, %v520_v30  ;;  %v537_v37 = vmul.f32 %v1265_v24, %v519_v31  ;;  %v502_v62 = vrot.slane %v501_v26, 1 }
 0x1e0   :  { %v479_v39 = vrot.slane %v478_v34, 2  ;;  %v506_v40 = vadd.f32 %v505_v60, %v504_v50  ;;  %v527_v43 = vmul.f32 %v927_v35, %v1209_v2  ;;  %v528_v32 = vmul.f32 %v927_v35, %v1213_v41 }
 0x1e1   :  { %560 = vperm.xlu1 %859, %v538_v36   ;;  %555 = vperm.xlu0 %858, %v537_v37   ;;  %v503_v29 = vadd.f32 %v502_v62, %v501_v26 }
 0x1e2   :  { %v507_v48 = vrot.slane %v506_v40, 2  ;;  %v545_v25 = vmul.f32 %v1265_v24, %v527_v43  ;;  %v546_v51 = vmul.f32 %v1260_v45, %v528_v32  ;;  %v480_v54 = vadd.f32 %v479_v39, %v478_v34 }
 0x1e3   :  { %v929_v53 = vpop.eup %928  ;;  %934 = vrcp.f32 %v503_v29 }
 0x1e4   :  { %v508_v55 = vadd.f32 %v507_v48, %v506_v40  ;;  %v530_v47 = vmul.f32 %v929_v53, %v1219_v27  ;;  %v481_v63 = vrot.slane %v480_v54, 1  ;;  %v529_v44 = vmul.f32 %v929_v53, %v1217_v42 }
 0x1e5   :  { %v931_v57 = vpop.eup %930  ;;  %595 = vperm.xlu1 %859, %v545_v25   ;;  %600 = vperm.xlu0 %858, %v546_v51  }
 0x1e6   :  { %v521_v2 = vmul.f32 %v931_v57, %v1223_v61  ;;  %v548_v41 = vmul.f32 %v1260_v45, %v530_v47  ;;  %v509_v58 = vrot.slane %v508_v55, 1  ;;  %v522_v7 = vmul.f32 %v931_v57, %v1227_v4 }
 0x1e7   :  { %v482_v49 = vadd.f32 %v481_v63, %v480_v54  ;;  %v547_v26 = vmul.f32 %v1265_v24, %v529_v44 }
 0x1e8   :  { %v539_v0 = vmul.f32 %v1265_v24, %v521_v2  ;;  %v510_v22 = vadd.f32 %v509_v58, %v508_v55  ;;  %v933_v56 = vpop.eup %932  ;;  %v540_v27 = vmul.f32 %v1260_v45, %v522_v7 }
 0x1e9   :  { %610 = vperm.xlu0 %858, %v548_v41   ;;  %v523_v4 = vmul.f32 %v933_v56, %v1233_v23  ;;  %v524_v34 = vmul.f32 %v933_v56, %v1235_v28 }
 0x1ea   :  { %565 = vperm.xlu1 %859, %v539_v0   ;;  %936 = vrcp.f32 %v510_v22 }
 0x1eb   :  { %938 = vrcp.f32 %v482_v49  ;;  %v541_v31 = vmul.f32 %v1265_v24, %v523_v4  ;;  %v542_v3 = vmul.f32 %v1260_v45, %v524_v34 }
 0x1ed   :  { %v935_v50 = vpop.eup %934 }
 0x1ee   :  { %570 = vperm.xlu1 %859, %v540_v27   ;;  %v532_v61 = vmul.f32 %v935_v50, %v1241_v46  ;;  %v531_v35 = vmul.f32 %v935_v50, %v1239_v38 }
 0x1f0   :  { %v550_v30 = vmul.f32 %v1260_v45, %v532_v61  ;;  %v549_v23 = vmul.f32 %v1265_v24, %v531_v35 }
 0x1f2   :  { %605 = vperm.xlu1 %859, %v547_v26   ;;  %620 = vperm.xlu0 %858, %v550_v30  }
 0x1f4   :  { %v937_v60 = vpop.eup %936 }
 0x1f5   :  { %v534_v42 = vmul.f32 %v937_v60, %v1253_v52  ;;  %v939_v36 = vpop.eup %938  ;;  %v533_v39 = vmul.f32 %v937_v60, %v1249_v1 }
 0x1f6   :  { %575 = vperm.xlu1 %859, %v541_v31   ;;  %v525_v37 = vmul.f32 %v939_v36, %v1245_v33  ;;  %v526_v62 = vmul.f32 %v939_v36, %v1247_v59 }
 0x1f7   :  { %v552_v46 = vmul.f32 %v1260_v45, %v534_v42  ;;  %v551_v38 = vmul.f32 %v1265_v24, %v533_v39 }
 0x1f8   :  { %v543_v28 = vmul.f32 %v1265_v24, %v525_v37  ;;  %v544_v52 = vmul.f32 %v1260_v45, %v526_v62 }
 0x1f9   :  { %630 = vperm.xlu0 %858, %v552_v46  }
 0x1fa   :  { %580 = vperm.xlu1 %859, %v542_v3  }
 0x1fe   :  { %615 = vperm.xlu1 %859, %v549_v23  }
 0x202   :  { %585 = vperm.xlu1 %859, %v543_v28  }
 0x206   :  { %590 = vperm.xlu1 %859, %v544_v52  }
 0x20a   :  { %625 = vperm.xlu1 %859, %v551_v38  }
 0x260   :  { %v561_v40 = vpop.permute.xlu1 %560  ;;  %v556_v32 = vpop.permute.xlu0 %555 }
 0x261   :  { %v634_v59 = vmul.f32 %v561_v40, %v1080_v8  ;;  %v633_v53 = vmul.f32 %v556_v32, %v1072_v5 }
 0x263   :  { %v650_v57 = vsel %vm70_vm0, %v634_v59, 0.0  ;;  %v649_v2 = vsel %vm70_vm0, %v633_v53, 0.0 }
 0x264   :  { %v596_v43 = vpop.permute.xlu1 %595  ;;  %v601_v33 = vpop.permute.xlu0 %600  ;;  %v651_v58 = vadd.f32 %v650_v57, %v649_v2 }
 0x265   :  { %v641_v1 = vmul.f32 %v596_v43, %v1074_v6  ;;  %v642_v24 = vmul.f32 %v601_v33, %v1082_v9 }
 0x267   :  { %v685_v5 = vsel %vm70_vm0, %v641_v1, 0.0 }
 0x268   :  { %v611_v55 = vpop.permute.xlu0 %610 }
 0x269   :  { %v566_v29 = vpop.permute.xlu1 %565  ;;  %v644_v6 = vmul.f32 %v611_v55, %v1098_v13  ;;  %v652_v13 = vrot.slane %v651_v58, 4 }
 0x26a   :  { %v635_v45 = vmul.f32 %v566_v29, %v1084_v10  ;;  %v686_v10 = vsel %vm70_vm0, %v642_v24, 0.0 }
 0x26b   :  { %v687_v49 = vadd.f32 %v686_v10, %v685_v5  ;;  %v653_v42 = vadd.f32 %v652_v13, %v651_v58 }
 0x26d   :  { %v571_v48 = vpop.permute.xlu1 %570  ;;  %v688_v4 = vrot.slane %v687_v49, 4  ;;  %v654_v52 = vrot.slane %v653_v42, 2 }
 0x26e   :  { %v636_v25 = vmul.f32 %v571_v48, %v1094_v12  ;;  %v658_v12 = vsel %vm70_vm0, %v635_v45, 0.0 }
 0x26f   :  { %v689_v36 = vadd.f32 %v688_v4, %v687_v49  ;;  %v655_v59 = vadd.f32 %v654_v52, %v653_v42  ;;  %v722_v49 = vstv %s1351_s4  ;;  %s1017_s4 = smov [#allocation8]  }
 0x270   :  { %v659_v54 = vsel %vm70_vm0, %v636_v25, 0.0  ;;  %s761_s23 = sshll.u32 %s1017_s4, 4  ;;  %s762_s23 = int_to_ptr.vmem [resolvable:$true] %s761_s23 }
 0x271   :  { %v606_v51 = vpop.permute.xlu1 %605  ;;  %v660_v41 = vadd.f32 %v659_v54, %v658_v12  ;;  %v621_v63 = vpop.permute.xlu0 %620  ;;  %v690_v32 = vrot.slane %v689_v36, 2  ;;  %s984_s24 = scalar_lea.vmem %s762_s23, 128  ;;  %p989_p3 = scmp.lt.s32.totalorder %s762_s23, %s762_s23 }
 0x272   :  { %v643_v8 = vmul.f32 %v606_v51, %v1086_v11  ;;  %v695_v11 = vsel %vm70_vm0, %v644_v6, 0.0  ;;  %v646_v27 = vmul.f32 %v621_v63, %v1114_v17  ;;  %p985_p2 = scmp.ne.s32.totalorder %s762_s23, %s984_s24  ;;  %p990_p4 = scmp.lt.s32.totalorder %s984_s24, %s984_s24 }
 0x273   :  { %v661_v56 = vrot.slane %v660_v41, 4 }
 0x274   :  { %v694_v7 = vsel %vm70_vm0, %v643_v8, 0.0  ;;  %p991_p5 = por %p990_p4, %p989_p3 }
 0x275   :  { %v576_v47 = vpop.permute.xlu1 %575  ;;  %v696_v61 = vadd.f32 %v695_v11, %v694_v7  ;;  %v662_v31 = vadd.f32 %v661_v56, %v660_v41 }
 0x276   :  { %v637_v9 = vmul.f32 %v576_v47, %v1100_v14  ;;  %v691_v47 = vadd.f32 %v690_v32, %v689_v36  ;;  %p992_p6 = pnand %p991_p5, %p985_p2 }
 0x277   :  { %v697_v3 = vrot.slane %v696_v61, 4  ;;  %v663_v23 = vrot.slane %v662_v31, 2 }
 0x278   :  { %v667_v44 = vsel %vm70_vm0, %v637_v9, 0.0  ;;  %v631_v39 = vpop.permute.xlu0 %630  ;;  %v692_v58 = vrot.slane %v691_v47, 1 }
 0x279   :  { %v581_v0 = vpop.permute.xlu1 %580  ;;  %v664_v29 = vadd.f32 %v663_v23, %v662_v31  ;;  %v648_v33 = vmul.f32 %v631_v39, %v1130_v21  ;;  %v656_v21 = vrot.slane %v655_v59, 1 }
 0x27a   :  { %v638_v22 = vmul.f32 %v581_v0, %v1110_v16  ;;  %v704_v16 = vsel %vm70_vm0, %v646_v27, 0.0 }
 0x27b   :  { %v665_v54 = vrot.slane %v664_v29, 1  ;;  %v713_v57 = vsel %vm70_vm0, %v648_v33, 0.0  ;;  %v657_v0 = vadd.f32 %v656_v21, %v655_v59 }
 0x27c   :  { %v668_v50 = vsel %vm70_vm0, %v638_v22, 0.0 }
 0x27d   :  { %v669_v14 = vadd.f32 %v668_v50, %v667_v44  ;;  %v616_v26 = vpop.permute.xlu1 %615  ;;  %v666_v10 = vadd.f32 %v665_v54, %v664_v29  ;;  %v693_v50 = vadd.f32 %v692_v58, %v691_v47 }
 0x27e   :  { %v645_v30 = vmul.f32 %v616_v26, %v1102_v15  ;;  %v698_v15 = vadd.f32 %v697_v3, %v696_v61  ;;  %v723_v61 = vadd.f32 %v722_v49, %v657_v0 }
 0x27f   :  { %v670_v34 = vrot.slane %v669_v14, 4  ;;  %v724_v11 = vadd.f32 %v722_v49, %v666_v10 }
 0x280   :  { %v703_v60 = vsel %vm70_vm0, %v645_v30, 0.0  ;;  %v699_v53 = vrot.slane %v698_v15, 2 }
 0x281   :  { %v671_v17 = vadd.f32 %v670_v34, %v669_v14  ;;  %v705_v46 = vadd.f32 %v704_v16, %v703_v60  ;;  %v586_v35 = vpop.permute.xlu1 %585  ;;  %v740_v31 = vsel %vm739_vm1, %v724_v11, %v723_v61  ;;  %v727_v60 = vadd.f32 %v722_v49, %v693_v50 }
 0x282   :  { %v639_v62 = vmul.f32 %v586_v35, %v1116_v18  ;;  %v700_v12 = vadd.f32 %v699_v53, %v698_v15 }
 0x283   :  { %v706_v37 = vrot.slane %v705_v46, 4  ;;  %v672_v28 = vrot.slane %v671_v17, 2 }
 0x284   :  { %v676_v25 = vsel %vm70_vm0, %v639_v62, 0.0 }
 0x285   :  { %v591_v38 = vpop.permute.xlu1 %590  ;;  %v707_v40 = vadd.f32 %v706_v37, %v705_v46  ;;  %v673_v48 = vadd.f32 %v672_v28, %v671_v17 }
 0x286   :  { %v640_v43 = vmul.f32 %v591_v38, %v1126_v20 }
 0x287   :  { %v708_v1 = vrot.slane %v707_v40, 2  ;;  %v674_v20 = vrot.slane %v673_v48, 1 }
 0x288   :  { %v677_v51 = vsel %vm70_vm0, %v640_v43, 0.0 }
 0x289   :  { %v678_v45 = vadd.f32 %v677_v51, %v676_v25  ;;  %v626_v18 = vpop.permute.xlu1 %625  ;;  %v709_v5 = vadd.f32 %v708_v1, %v707_v40  ;;  %v675_v63 = vadd.f32 %v674_v20, %v673_v48 }
 0x28a   :  { %v647_v24 = vmul.f32 %v626_v18, %v1118_v19  ;;  %v701_v19 = vrot.slane %v700_v12, 1 }
 0x28b   :  { %v679_v55 = vrot.slane %v678_v45, 4  ;;  %v710_v56 = vrot.slane %v709_v5, 1  ;;  %v725_v13 = vadd.f32 %v722_v49, %v675_v63 }
 0x28c   :  { %v712_v2 = vsel %vm70_vm0, %v647_v24, 0.0  ;;  %v702_v14 = vadd.f32 %v701_v19, %v700_v12 }
 0x28d   :  { %v680_v8 = vadd.f32 %v679_v55, %v678_v45  ;;  %v714_v41 = vadd.f32 %v713_v57, %v712_v2  ;;  %v711_v4 = vadd.f32 %v710_v56, %v709_v5  ;;  %v742_v42 = vsel %vm741_vm2, %v725_v13, %v740_v31 }
 0x28e   :  { %v728_v3 = vadd.f32 %v722_v49, %v702_v14 }
 0x28f   :  { %v681_v6 = vrot.slane %v680_v8, 2  ;;  %v715_v9 = vrot.slane %v714_v41, 4  ;;  %v729_v35 = vadd.f32 %v722_v49, %v711_v4 }
 0x291   :  { %v682_v7 = vadd.f32 %v681_v6, %v680_v8  ;;  %v716_v22 = vadd.f32 %v715_v9, %v714_v41 }
 0x293   :  { %v683_v27 = vrot.slane %v682_v7, 1  ;;  %v717_v44 = vrot.slane %v716_v22, 2 }
 0x295   :  { %v684_v26 = vadd.f32 %v683_v27, %v682_v7  ;;  %v718_v30 = vadd.f32 %v717_v44, %v716_v22 }
 0x297   :  { %v726_v34 = vadd.f32 %v722_v49, %v684_v26  ;;  %v719_v16 = vrot.slane %v718_v30, 1 }
 0x299   :  { %v720_v17 = vadd.f32 %v719_v16, %v718_v30  ;;  %v744_v46 = vsel %vm743_vm3, %v726_v34, %v742_v42 }
 0x29a   :  { %v746_v36 = vsel %vm745_vm4, %v727_v60, %v744_v46 }
 0x29b   :  { %v730_v23 = vadd.f32 %v722_v49, %v720_v17  ;;  %v748_v37 = vsel %vm747_vm5, %v728_v3, %v746_v36 }
 0x29c   :  { %v750_v28 = vsel %vm749_vm6, %v729_v35, %v748_v37 }
 0x29d   :  { %v752_v62 = vsel %vm751_vm7, %v730_v23, %v750_v28 }
 0x29e   :  { %754 = vst.msk [vmem:[#allocation8] sm:$0xff] %vm70_vm0, %v752_v62 }
 0x29f   :  { %995 = shalt.err (!%p992_p6)
}
 0x2a0   :  { %s996_s27 = scalar_lea.hbm %s1352_s5, 128 }
 0x2a1   :  { %p997_p7 = scmp.ne.s32.totalorder %s1352_s5, %s996_s27  ;;  %p1000_p8 = scmp.lt.u32.totalorder %s996_s27, %s1352_s5 }
 0x2a3   :  { %p1002_p9 = pnand %p1000_p8, %p997_p7 }
 0x2a5   :  { %1005 = shalt.err (!%p1002_p9)
}
 0x2a6   :  { %764 = dma.vmem_to_hbm [thread:$0]  %s762_s23, 128, %s1352_s5, [#allocation5]  }
 0x2a7   :  { %1010 = dma.done.wait [#allocation5], 128  }
 0x2a8   :  { %1011 = vsyncadd [#allocation5], 4294967168 }
 0x2a9   :  { %768 = vsyncpa [#allocation4], 1 }
 0x2aa   :  { %769 = vsyncpa [#allocation7], 1 }
 0x2ab   :  { %770 = vsyncpa [#allocation5], 1 }

</bundles_post_ra>
